<compile_context>
chip_gen: v5e
topology: v5e:2x2
jax: 0.10.0
libtpu: 0.0.40
codegen_flags: <defaults>
</compile_context>

<pallas_src>
import functools

import numpy as np
import jax
import jax.numpy as jnp
from jax.experimental import pallas as pl
from jax.experimental.pallas import tpu as pltpu

HIDDEN_DIM = 128
FRONT_IN = 4
FRONT_OUT = 64 * 2 * 2      # 256
N_LANES = 256               # lane width of the parameter slab
_ADV_COL = 128              # lane offset of the advantage columns
OUT_PAD = 128               # lane-dense padded output width

# Row offsets inside the parameter slab (all multiples of 8).
ROW_W0 = 0
ROW_B0 = 8
ROW_BVA1 = 9
ROW_BHEAD = 10
ROW_WVA1 = 16
ROW_WHEAD = ROW_WVA1 + FRONT_OUT      # 272
SLAB_ROWS = ROW_WHEAD + FRONT_OUT     # 528


def _dqn_kernel(x_ref, slab_ref, out_ref, *, action_dim):
    x = x_ref[...]                                   # [B, 4]

    b0 = slab_ref[ROW_B0:ROW_B0 + 1, :]              # [1, 256]
    bva1 = slab_ref[ROW_BVA1:ROW_BVA1 + 1, :]        # [1, 256]  (bv1 | ba1)
    bhead = slab_ref[ROW_BHEAD:ROW_BHEAD + 1, :]     # [1, 256]  (bv2 | ba2, padded)

    # ---- front Linear(4, 256) + ReLU on the VPU: contraction dim is only 4,
    #      so 4 broadcast FMAs beat a degenerate MXU matmul.
    acc = x[:, 0:1] * slab_ref[ROW_W0:ROW_W0 + 1, :]
    for k in range(1, FRONT_IN):
        acc = acc + x[:, k:k + 1] * slab_ref[ROW_W0 + k:ROW_W0 + k + 1, :]
    h = jnp.maximum(acc + b0, 0.0)                   # [B, 256]

    # ---- fused value/advantage hidden layer: a single N=256 matmul.
    wva1 = slab_ref[ROW_WVA1:ROW_WVA1 + FRONT_OUT, :]          # [256, 256]
    hva = jnp.dot(h, wva1, preferred_element_type=jnp.float32)
    hva = jnp.maximum(hva + bva1, 0.0)               # [B, 256]  (hv | ha)

    # ---- fused heads: block-diagonal [256, 256] weight (tile-aligned).
    #      lane 0              <- value head      (rows 0..127   = Wv2)
    #      lanes 128..128+A-1  <- advantage head  (rows 128..255 = Wa2)
    #      remaining lanes are zero weight + zero bias -> head entries exactly 0.
    whead = slab_ref[ROW_WHEAD:ROW_WHEAD + FRONT_OUT, :]       # [256, 256]
    head = jnp.dot(hva, whead, preferred_element_type=jnp.float32) + bhead

    value = head[:, 0:1]                             # [B, 1]
    adv = head[:, _ADV_COL:_ADV_COL + OUT_PAD]       # [B, 128] (cols A.. are 0)

    # NOTE: torch code does advantage.sum() over ALL elements (scalar), not
    # per-row; reproduced exactly.  Padded columns are exactly zero, so
    # summing the full 128-lane tile equals summing the real A columns.
    adv_sum = jnp.sum(adv)

    # Lane-dense [B, 128] store; the wrapper slices [:, :A].
    out_ref[...] = value + (adv - adv_sum / action_dim)


def pack_params(p, action_dim):
    """Pack raw per-layer params into one tile-aligned [528, 256] f32 slab."""
    assert action_dim <= _ADV_COL
    slab = jnp.zeros((SLAB_ROWS, N_LANES), jnp.float32)
    # front layer weight (rows 0..3)
    slab = slab.at[ROW_W0:ROW_W0 + FRONT_IN, :].set(p["w0"])
    # biases
    slab = slab.at[ROW_B0, :].set(p["b0"][0])
    slab = slab.at[ROW_BVA1, 0:HIDDEN_DIM].set(p["bv1"][0])
    slab = slab.at[ROW_BVA1, HIDDEN_DIM:FRONT_OUT].set(p["ba1"][0])
    slab = slab.at[ROW_BHEAD, 0:1].set(p["bv2"][0])
    slab = slab.at[ROW_BHEAD, _ADV_COL:_ADV_COL + action_dim].set(p["ba2"][0])
    # fused hidden weight  Wv1 | Wa1
    slab = slab.at[ROW_WVA1:ROW_WVA1 + FRONT_OUT, 0:HIDDEN_DIM].set(p["wv1"])
    slab = slab.at[ROW_WVA1:ROW_WVA1 + FRONT_OUT, HIDDEN_DIM:FRONT_OUT].set(p["wa1"])
    # block-diagonal head weight
    slab = slab.at[ROW_WHEAD:ROW_WHEAD + HIDDEN_DIM, 0:1].set(p["wv2"])
    slab = slab.at[ROW_WHEAD + HIDDEN_DIM:ROW_WHEAD + FRONT_OUT,
                   _ADV_COL:_ADV_COL + action_dim].set(p["wa2"])
    return slab


def dqn_forward(x, slab, action_dim):
    """x: [B, 4] float32. slab: output of pack_params. Returns [B, action_dim]."""
    B = x.shape[0]
    vmem = pl.BlockSpec(memory_space=pltpu.MemorySpace.VMEM)
    kernel = functools.partial(_dqn_kernel, action_dim=action_dim)
    out_padded = pl.pallas_call(
        kernel,
        out_shape=jax.ShapeDtypeStruct((B, OUT_PAD), jnp.float32),
        in_specs=[vmem, vmem],
        out_specs=vmem,
    )(x, slab)
    return out_padded[:, :action_dim]


def init_params(key, action_dim):
    """Deterministic parameter init; weights stored as [in, out] (pre-transposed)."""
    ks = jax.random.split(key, 10)

    def lin(kw, kb, fan_in, fan_out):
        # torch.nn.Linear default: U(-1/sqrt(fan_in), 1/sqrt(fan_in))
        bound = 1.0 / np.sqrt(fan_in)
        w = jax.random.uniform(kw, (fan_in, fan_out), jnp.float32, -bound, bound)
        b = jax.random.uniform(kb, (1, fan_out), jnp.float32, -bound, bound)
        return w, b

    w0, b0 = lin(ks[0], ks[1], FRONT_IN, FRONT_OUT)
    wv1, bv1 = lin(ks[2], ks[3], FRONT_OUT, HIDDEN_DIM)
    wa1, ba1 = lin(ks[4], ks[5], FRONT_OUT, HIDDEN_DIM)
    wv2, bv2 = lin(ks[6], ks[7], HIDDEN_DIM, 1)
    wa2, ba2 = lin(ks[8], ks[9], HIDDEN_DIM, action_dim)
    return {
        "w0": w0, "b0": b0,
        "wv1": wv1, "bv1": bv1,
        "wa1": wa1, "ba1": ba1,
        "wv2": wv2, "bv2": bv2,
        "wa2": wa2, "ba2": ba2,
    }


def dqn_reference(x, p):
    """Pure-JAX reference mirroring the PyTorch forward (unfused params)."""
    h = jnp.maximum(x @ p["w0"] + p["b0"], 0.0)
    hv = jnp.maximum(h @ p["wv1"] + p["bv1"], 0.0)
    ha = jnp.maximum(h @ p["wa1"] + p["ba1"], 0.0)
    v = hv @ p["wv2"] + p["bv2"]
    a = ha @ p["wa2"] + p["ba2"]
    return v + (a - a.sum() / a.shape[-1])


if __name__ == "__main__":
    key = jax.random.PRNGKey(0)
    k_x, k_p = jax.random.split(key)

    batch = 8
    action_dim = 4
    x = jax.random.normal(k_x, (batch, 4), jnp.float32)
    params = init_params(k_p, action_dim)
    slab = pack_params(params, action_dim)

    out = dqn_forward(x, slab, action_dim)
    out = jax.block_until_ready(out)

    ref = dqn_reference(x, params)
    assert out.shape == (batch, action_dim)
    np.testing.assert_allclose(np.asarray(out), np.asarray(ref), rtol=1e-5, atol=1e-5)

    print("KERNEL_OK")
</pallas_src>

<mosaic_0001>
module attributes {stable_mosaic.version = 11 : i64} {
  func.func @_dqn_kernel(%arg0: memref<8x4xf32, #tpu.memory_space<vmem>>, %arg1: memref<528x256xf32, #tpu.memory_space<vmem>>, %arg2: memref<8x128xf32, #tpu.memory_space<vmem>>) attributes {dimension_semantics = [], scalar_prefetch = 0 : i64, scratch_operands = 0 : i64, tpu.core_type = #tpu.core_type<tc>} {
    %c0 = arith.constant 0 : index
    %c0_0 = arith.constant 0 : index
    %0 = vector.load %arg0[%c0, %c0_0] : memref<8x4xf32, #tpu.memory_space<vmem>>, vector<8x4xf32>
    %c8 = arith.constant 8 : index
    %c0_1 = arith.constant 0 : index
    %1 = vector.load %arg1[%c8, %c0_1] : memref<528x256xf32, #tpu.memory_space<vmem>>, vector<1x256xf32>
    %c9 = arith.constant 9 : index
    %c0_2 = arith.constant 0 : index
    %2 = vector.load %arg1[%c9, %c0_2] : memref<528x256xf32, #tpu.memory_space<vmem>>, vector<1x256xf32>
    %c10 = arith.constant 10 : index
    %c0_3 = arith.constant 0 : index
    %3 = vector.load %arg1[%c10, %c0_3] : memref<528x256xf32, #tpu.memory_space<vmem>>, vector<1x256xf32>
    %4 = vector.extract_strided_slice %0 {offsets = [0, 0], sizes = [8, 1], strides = [1, 1]} : vector<8x4xf32> to vector<8x1xf32>
    %c0_4 = arith.constant 0 : index
    %c0_5 = arith.constant 0 : index
    %5 = vector.load %arg1[%c0_4, %c0_5] : memref<528x256xf32, #tpu.memory_space<vmem>>, vector<1x256xf32>
    %6 = vector.broadcast %4 : vector<8x1xf32> to vector<8x256xf32>
    %7 = vector.broadcast %5 : vector<1x256xf32> to vector<8x256xf32>
    %8 = arith.mulf %6, %7 : vector<8x256xf32>
    %9 = vector.extract_strided_slice %0 {offsets = [0, 1], sizes = [8, 1], strides = [1, 1]} : vector<8x4xf32> to vector<8x1xf32>
    %c1 = arith.constant 1 : index
    %c0_6 = arith.constant 0 : index
    %10 = vector.load %arg1[%c1, %c0_6] : memref<528x256xf32, #tpu.memory_space<vmem>>, vector<1x256xf32>
    %11 = vector.broadcast %9 : vector<8x1xf32> to vector<8x256xf32>
    %12 = vector.broadcast %10 : vector<1x256xf32> to vector<8x256xf32>
    %13 = arith.mulf %11, %12 : vector<8x256xf32>
    %14 = arith.addf %8, %13 : vector<8x256xf32>
    %15 = vector.extract_strided_slice %0 {offsets = [0, 2], sizes = [8, 1], strides = [1, 1]} : vector<8x4xf32> to vector<8x1xf32>
    %c2 = arith.constant 2 : index
    %c0_7 = arith.constant 0 : index
    %16 = vector.load %arg1[%c2, %c0_7] : memref<528x256xf32, #tpu.memory_space<vmem>>, vector<1x256xf32>
    %17 = vector.broadcast %15 : vector<8x1xf32> to vector<8x256xf32>
    %18 = vector.broadcast %16 : vector<1x256xf32> to vector<8x256xf32>
    %19 = arith.mulf %17, %18 : vector<8x256xf32>
    %20 = arith.addf %14, %19 : vector<8x256xf32>
    %21 = vector.extract_strided_slice %0 {offsets = [0, 3], sizes = [8, 1], strides = [1, 1]} : vector<8x4xf32> to vector<8x1xf32>
    %c3 = arith.constant 3 : index
    %c0_8 = arith.constant 0 : index
    %22 = vector.load %arg1[%c3, %c0_8] : memref<528x256xf32, #tpu.memory_space<vmem>>, vector<1x256xf32>
    %23 = vector.broadcast %21 : vector<8x1xf32> to vector<8x256xf32>
    %24 = vector.broadcast %22 : vector<1x256xf32> to vector<8x256xf32>
    %25 = arith.mulf %23, %24 : vector<8x256xf32>
    %26 = arith.addf %20, %25 : vector<8x256xf32>
    %27 = vector.broadcast %1 : vector<1x256xf32> to vector<8x256xf32>
    %28 = arith.addf %26, %27 : vector<8x256xf32>
    %cst = arith.constant 0.000000e+00 : f32
    %29 = vector.broadcast %cst : f32 to vector<8x256xf32>
    %30 = arith.maximumf %28, %29 : vector<8x256xf32>
    %c16 = arith.constant 16 : index
    %c0_9 = arith.constant 0 : index
    %31 = vector.load %arg1[%c16, %c0_9] : memref<528x256xf32, #tpu.memory_space<vmem>>, vector<256x256xf32>
    %cst_10 = arith.constant dense<0.000000e+00> : vector<8x256xf32>
    %32 = tpu.matmul %30, %31, %cst_10 {dimension_numbers = #tpu.dot_dimension_numbers<[1], [0], [0], [1], [0, 0, 1, 1], [], []>} : vector<8x256xf32>, vector<256x256xf32>, vector<8x256xf32> -> vector<8x256xf32>
    %33 = vector.broadcast %2 : vector<1x256xf32> to vector<8x256xf32>
    %34 = arith.addf %32, %33 : vector<8x256xf32>
    %cst_11 = arith.constant 0.000000e+00 : f32
    %35 = vector.broadcast %cst_11 : f32 to vector<8x256xf32>
    %36 = arith.maximumf %34, %35 : vector<8x256xf32>
    %c272 = arith.constant 272 : index
    %c0_12 = arith.constant 0 : index
    %37 = vector.load %arg1[%c272, %c0_12] : memref<528x256xf32, #tpu.memory_space<vmem>>, vector<256x256xf32>
    %cst_13 = arith.constant dense<0.000000e+00> : vector<8x256xf32>
    %38 = tpu.matmul %36, %37, %cst_13 {dimension_numbers = #tpu.dot_dimension_numbers<[1], [0], [0], [1], [0, 0, 1, 1], [], []>} : vector<8x256xf32>, vector<256x256xf32>, vector<8x256xf32> -> vector<8x256xf32>
    %39 = vector.broadcast %3 : vector<1x256xf32> to vector<8x256xf32>
    %40 = arith.addf %38, %39 : vector<8x256xf32>
    %41 = vector.extract_strided_slice %40 {offsets = [0, 0], sizes = [8, 1], strides = [1, 1]} : vector<8x256xf32> to vector<8x1xf32>
    %42 = vector.extract_strided_slice %40 {offsets = [0, 128], sizes = [8, 128], strides = [1, 1]} : vector<8x256xf32> to vector<8x128xf32>
    %43 = vector.shape_cast %42 : vector<8x128xf32> to vector<1x8x128xf32>
    %cst_14 = arith.constant dense<0.000000e+00> : vector<1xf32>
    %44 = vector.multi_reduction <add>, %43, %cst_14 [1, 2] : vector<1x8x128xf32> to vector<1xf32>
    %45 = vector.shape_cast %44 : vector<1xf32> to vector<1x1x1xf32>
    %46 = vector.extract %45[0, 0, 0] : f32 from vector<1x1x1xf32>
    %cst_15 = arith.constant 4.000000e+00 : f32
    %47 = arith.divf %46, %cst_15 : f32
    %48 = vector.broadcast %47 : f32 to vector<8x128xf32>
    %49 = arith.subf %42, %48 : vector<8x128xf32>
    %50 = vector.broadcast %41 : vector<8x1xf32> to vector<8x128xf32>
    %51 = arith.addf %50, %49 : vector<8x128xf32>
    %c0_16 = arith.constant 0 : index
    %c0_17 = arith.constant 0 : index
    %52 = vector.load %arg2[%c0_16, %c0_17] : memref<8x128xf32, #tpu.memory_space<vmem>>, vector<8x128xf32>
    tpu.vector_store %arg2[%c0_16, %c0_17], %51 {strides = array<i32>} : memref<8x128xf32, #tpu.memory_space<vmem>>, vector<8x128xf32>,
    return
  }
}

</mosaic_0001>

<bundles_post_ra>
// kernel: tpu_custom_call.1
= control target key start
LH: loop header
LB: loop body
LE: loop exit
PB: predicated region body
PF: predicated region fallthrough
CT: control target
= control target key end

     0   :  { %7 = vsyncpa [#allocation3], 0  ;;  %s552_s0 = inlined_call_operand.vmem [shape: f32[8,4], index: 0, kind: input, shape index: {}]   ;;  %s553_s1 = inlined_call_operand.hbm [shape: f32[528,256], index: 1, kind: input, shape index: {}]   ;;  %s554_s2 = inlined_call_operand.hbm [shape: f32[8,128], index: 2, kind: output, shape index: {}]  }
   0x1   :  { %8 = vsyncpa [#allocation4], 0  ;;  %s15_s11 = sshll.u32 %s553_s1, 4  ;;  %s519_s12 = smov [#allocation2]   ;;  %s16_s11 = int_to_ptr.hbm [resolvable:$true] %s15_s11 }
   0x2   :  { %s17_s13 = sshll.u32 %s519_s12, 4  ;;  %s520_s14 = smov 256   ;;  %s18_s13 = int_to_ptr.vmem [resolvable:$true] %s17_s13 }
   0x3   :  { %s521_s15 = smov 16  }
   0x4   :  { %23 = dma.hbm_to_vmem [thread:$0]  %s16_s11, 16896, %s18_s13, [#allocation3], %s520_s14, %s520_s14, %s521_s15  }
   0x5   :  { %515 = dma.done.wait [#allocation3], 16896  }
   0x6   :  { %516 = vsyncadd [#allocation3], 4294950400  ;;  %v522_v0 = vmov 0   ;;  %v523_v1 = vmov 2   ;;  %v28_v2 = vld [vmem:[%s552_s0] sm:$0xff]  ;;  %v132_v3 = vld [vmem:[#allocation2 + $0x110] sm:$0xff] }
   0x7   :  { %459 = vset.pattern.permute.xlu0 %v522_v0  ;;  %461 = vset.pattern.permute.xlu1 %v523_v1  ;;  %v164_v4 = vld [vmem:[#allocation2 + $0x210] sm:$0xff]  ;;  %v133_v5 = vld [vmem:[#allocation2 + $0x118] sm:$0xff]  ;;  %v130_v7 = vld [vmem:[#allocation2 + $0x100] sm:$0xff]  ;;  %v524_v19 = vmov 1   ;;  %v525_v20 = vmov 3   ;;  %s527_s19 = smov [#allocation5]  }
   0x8   :  { %463 = vset.pattern.permute.xlu2 %v522_v0  ;;  %38 = vperm.xlu0 %459, %v28_v2   ;;  %v165_v6 = vld [vmem:[#allocation2 + $0x218] sm:$0xff]  ;;  %v162_v8 = vld [vmem:[#allocation2 + $0x200] sm:$0xff]  ;;  %v131_v9 = vld [vmem:[#allocation2 + $0x108] sm:$0xff]  ;;  %s434_s20 = sshll.u32 %s527_s19, 4  ;;  %s436_s23 = sshll.u32 %s554_s2, 4  ;;  %s435_s20 = int_to_ptr.vmem [resolvable:$true] %s434_s20  ;;  %s437_s23 = int_to_ptr.hbm [resolvable:$true] %s436_s23 }
   0x9   :  { %66 = vperm.xlu1 %461, %v28_v2   ;;  %171 = vmatpush.msra.mxu0 %v132_v3  ;;  %v163_v10 = vld [vmem:[#allocation2 + $0x208] sm:$0xff]  ;;  %v128_v11 = vld [vmem:[#allocation2 + $0xf0] sm:$0xff]  ;;  %v129_v13 = vld [vmem:[#allocation2 + $0xf8] sm:$0xff] }
   0xa   :  { %191 = vmatpush.msra.mxu1 %v164_v4  ;;  %211 = vmatpush.msra.mxu2 %v133_v5  ;;  %v160_v12 = vld [vmem:[#allocation2 + $0x1f0] sm:$0xff]  ;;  %v161_v14 = vld [vmem:[#allocation2 + $0x1f8] sm:$0xff]  ;;  %v126_v15 = vld [vmem:[#allocation2 + $0xe0] sm:$0xff] }
   0xb   :  { %231 = vmatpush.msra.mxu3 %v165_v6  ;;  %172 = vmatpush.msra.mxu0 %v130_v7  ;;  %v158_v16 = vld [vmem:[#allocation2 + $0x1e0] sm:$0xff]  ;;  %v127_v17 = vld [vmem:[#allocation2 + $0xe8] sm:$0xff]  ;;  %v124_v21 = vld [vmem:[#allocation2 + $0xd0] sm:$0xff] }
   0xc   :  { %192 = vmatpush.msra.mxu1 %v162_v8  ;;  %212 = vmatpush.msra.mxu2 %v131_v9  ;;  %v159_v18 = vld [vmem:[#allocation2 + $0x1e8] sm:$0xff]  ;;  %v156_v22 = vld [vmem:[#allocation2 + $0x1d0] sm:$0xff]  ;;  %v125_v23 = vld [vmem:[#allocation2 + $0xd8] sm:$0xff] }
   0xd   :  { %232 = vmatpush.msra.mxu3 %v163_v10  ;;  %173 = vmatpush.msra.mxu0 %v128_v11  ;;  %v157_v24 = vld [vmem:[#allocation2 + $0x1d8] sm:$0xff]  ;;  %v122_v25 = vld [vmem:[#allocation2 + $0xc0] sm:$0xff]  ;;  %v123_v27 = vld [vmem:[#allocation2 + $0xc8] sm:$0xff] }
   0xe   :  { %193 = vmatpush.msra.mxu1 %v160_v12  ;;  %213 = vmatpush.msra.mxu2 %v129_v13  ;;  %v154_v26 = vld [vmem:[#allocation2 + $0x1c0] sm:$0xff]  ;;  %v155_v28 = vld [vmem:[#allocation2 + $0x1c8] sm:$0xff]  ;;  %v120_v29 = vld [vmem:[#allocation2 + $0xb0] sm:$0xff] }
   0xf   :  { %233 = vmatpush.msra.mxu3 %v161_v14  ;;  %174 = vmatpush.msra.mxu0 %v126_v15  ;;  %v152_v30 = vld [vmem:[#allocation2 + $0x1b0] sm:$0xff]  ;;  %v121_v31 = vld [vmem:[#allocation2 + $0xb8] sm:$0xff]  ;;  %v118_v33 = vld [vmem:[#allocation2 + $0xa0] sm:$0xff] }
  0x10   :  { %194 = vmatpush.msra.mxu1 %v158_v16  ;;  %460 = vset.pattern.permute.xlu0 %v524_v19  ;;  %v153_v32 = vld [vmem:[#allocation2 + $0x1b8] sm:$0xff]  ;;  %v150_v34 = vld [vmem:[#allocation2 + $0x1a0] sm:$0xff]  ;;  %v119_v35 = vld [vmem:[#allocation2 + $0xa8] sm:$0xff] }
  0x11   :  { %462 = vset.pattern.permute.xlu1 %v525_v20  ;;  %51 = vperm.xlu0 %460, %v28_v2   ;;  %v151_v36 = vld [vmem:[#allocation2 + $0x1a8] sm:$0xff]  ;;  %v116_v37 = vld [vmem:[#allocation2 + $0x90] sm:$0xff]  ;;  %v117_v39 = vld [vmem:[#allocation2 + $0x98] sm:$0xff] }
  0x12   :  { %81 = vperm.xlu1 %462, %v28_v2   ;;  %214 = vmatpush.msra.mxu2 %v127_v17  ;;  %v148_v38 = vld [vmem:[#allocation2 + $0x190] sm:$0xff]  ;;  %v149_v40 = vld [vmem:[#allocation2 + $0x198] sm:$0xff]  ;;  %v114_v41 = vld [vmem:[#allocation2 + $0x80] sm:$0xff] }
  0x13   :  { %234 = vmatpush.msra.mxu3 %v159_v18  ;;  %175 = vmatpush.msra.mxu0 %v124_v21  ;;  %v146_v42 = vld [vmem:[#allocation2 + $0x180] sm:$0xff]  ;;  %v115_v43 = vld [vmem:[#allocation2 + $0x88] sm:$0xff]  ;;  %v112_v45 = vld [vmem:[#allocation2 + $0x70] sm:$0xff] }
  0x14   :  { %195 = vmatpush.msra.mxu1 %v156_v22  ;;  %215 = vmatpush.msra.mxu2 %v125_v23  ;;  %v147_v44 = vld [vmem:[#allocation2 + $0x188] sm:$0xff]  ;;  %v144_v46 = vld [vmem:[#allocation2 + $0x170] sm:$0xff]  ;;  %v113_v47 = vld [vmem:[#allocation2 + $0x78] sm:$0xff] }
  0x15   :  { %235 = vmatpush.msra.mxu3 %v157_v24  ;;  %176 = vmatpush.msra.mxu0 %v122_v25  ;;  %v145_v48 = vld [vmem:[#allocation2 + $0x178] sm:$0xff]  ;;  %v110_v49 = vld [vmem:[#allocation2 + $0x60] sm:$0xff]  ;;  %v111_v51 = vld [vmem:[#allocation2 + $0x68] sm:$0xff] }
  0x16   :  { %196 = vmatpush.msra.mxu1 %v154_v26  ;;  %216 = vmatpush.msra.mxu2 %v123_v27  ;;  %v142_v50 = vld [vmem:[#allocation2 + $0x160] sm:$0xff]  ;;  %v143_v52 = vld [vmem:[#allocation2 + $0x168] sm:$0xff]  ;;  %v108_v53 = vld [vmem:[#allocation2 + $0x50] sm:$0xff] }
  0x17   :  { %236 = vmatpush.msra.mxu3 %v155_v28  ;;  %177 = vmatpush.msra.mxu0 %v120_v29  ;;  %v140_v54 = vld [vmem:[#allocation2 + $0x150] sm:$0xff]  ;;  %v109_v55 = vld [vmem:[#allocation2 + $0x58] sm:$0xff]  ;;  %v106_v57 = vld [vmem:[#allocation2 + $0x40] sm:$0xff] }
  0x18   :  { %197 = vmatpush.msra.mxu1 %v152_v30  ;;  %217 = vmatpush.msra.mxu2 %v121_v31  ;;  %v141_v56 = vld [vmem:[#allocation2 + $0x158] sm:$0xff]  ;;  %v138_v58 = vld [vmem:[#allocation2 + $0x140] sm:$0xff]  ;;  %v107_v59 = vld [vmem:[#allocation2 + $0x48] sm:$0xff] }
  0x19   :  { %464 = vset.pattern.permute.xlu0 %v522_v0  ;;  %237 = vmatpush.msra.mxu3 %v153_v32  ;;  %v139_v60 = vld [vmem:[#allocation2 + $0x148] sm:$0xff]  ;;  %v104_v61 = vld [vmem:[#allocation2 + $0x30] sm:$0xff]  ;;  %v105_v63 = vld [vmem:[#allocation2 + $0x38] sm:$0xff] }
  0x1a   :  { %178 = vmatpush.msra.mxu0 %v118_v33  ;;  %198 = vmatpush.msra.mxu1 %v150_v34  ;;  %v136_v62 = vld [vmem:[#allocation2 + $0x130] sm:$0xff]  ;;  %v137_v0 = vld [vmem:[#allocation2 + $0x138] sm:$0xff]  ;;  %v102_v1 = vld [vmem:[#allocation2 + $0x20] sm:$0xff] }
  0x1b   :  { %218 = vmatpush.msra.mxu2 %v119_v35  ;;  %238 = vmatpush.msra.mxu3 %v151_v36  ;;  %v134_v2 = vld [vmem:[#allocation2 + $0x120] sm:$0xff]  ;;  %v103_v3 = vld [vmem:[#allocation2 + $0x28] sm:$0xff]  ;;  %v283_v5 = vld [vmem:[#allocation2 + $0x310] sm:$0xff] }
  0x1c   :  { %179 = vmatpush.msra.mxu0 %v116_v37  ;;  %199 = vmatpush.msra.mxu1 %v148_v38  ;;  %v135_v4 = vld [vmem:[#allocation2 + $0x128] sm:$0xff]  ;;  %v284_v6 = vld [vmem:[#allocation2 + $0x318] sm:$0xff]  ;;  %v281_v7 = vld [vmem:[#allocation2 + $0x300] sm:$0xff] }
  0x1d   :  { %219 = vmatpush.msra.mxu2 %v117_v39  ;;  %239 = vmatpush.msra.mxu3 %v149_v40  ;;  %v282_v8 = vld [vmem:[#allocation2 + $0x308] sm:$0xff]  ;;  %v279_v9 = vld [vmem:[#allocation2 + $0x2f0] sm:$0xff]  ;;  %v280_v10 = vld [vmem:[#allocation2 + $0x2f8] sm:$0xff] }
  0x1e   :  { %180 = vmatpush.msra.mxu0 %v114_v41  ;;  %200 = vmatpush.msra.mxu1 %v146_v42  ;;  %v315_v11 = vld [vmem:[#allocation2 + $0x410] sm:$0xff]  ;;  %v316_v12 = vld [vmem:[#allocation2 + $0x418] sm:$0xff]  ;;  %v313_v13 = vld [vmem:[#allocation2 + $0x400] sm:$0xff] }
  0x1f   :  { %220 = vmatpush.msra.mxu2 %v115_v43  ;;  %240 = vmatpush.msra.mxu3 %v147_v44  ;;  %v277_v14 = vld [vmem:[#allocation2 + $0x2e0] sm:$0xff]  ;;  %v278_v15 = vld [vmem:[#allocation2 + $0x2e8] sm:$0xff]  ;;  %v311_v17 = vld [vmem:[#allocation2 + $0x3f0] sm:$0xff] }
  0x20   :  { %181 = vmatpush.msra.mxu0 %v112_v45  ;;  %201 = vmatpush.msra.mxu1 %v144_v46  ;;  %v314_v16 = vld [vmem:[#allocation2 + $0x408] sm:$0xff]  ;;  %v312_v18 = vld [vmem:[#allocation2 + $0x3f8] sm:$0xff]  ;;  %v275_v19 = vld [vmem:[#allocation2 + $0x2d0] sm:$0xff] }
  0x21   :  { %221 = vmatpush.msra.mxu2 %v113_v47  ;;  %241 = vmatpush.msra.mxu3 %v145_v48  ;;  %v276_v20 = vld [vmem:[#allocation2 + $0x2d8] sm:$0xff]  ;;  %v309_v21 = vld [vmem:[#allocation2 + $0x3e0] sm:$0xff]  ;;  %v274_v23 = vld [vmem:[#allocation2 + $0x2c8] sm:$0xff] }
  0x22   :  { %182 = vmatpush.msra.mxu0 %v110_v49  ;;  %202 = vmatpush.msra.mxu1 %v142_v50  ;;  %v273_v22 = vld [vmem:[#allocation2 + $0x2c0] sm:$0xff]  ;;  %v310_v26 = vld [vmem:[#allocation2 + $0x3e8] sm:$0xff]  ;;  %v307_v27 = vld [vmem:[#allocation2 + $0x3d0] sm:$0xff] }
  0x23   :  { %222 = vmatpush.msra.mxu2 %v111_v51  ;;  %242 = vmatpush.msra.mxu3 %v143_v52  ;;  %v35_v28 = vld [vmem:[#allocation2] ss:$8 sm:$0x3]  ;;  %v271_v29 = vld [vmem:[#allocation2 + $0x2b0] sm:$0xff]  ;;  %v272_v30 = vld [vmem:[#allocation2 + $0x2b8] sm:$0xff] }
  0x24   :  { %183 = vmatpush.msra.mxu0 %v108_v53  ;;  %203 = vmatpush.msra.mxu1 %v140_v54  ;;  %v64_v31 = vld [vmem:[#allocation2 + $0x2] ss:$8 sm:$0x3]  ;;  %v308_v32 = vld [vmem:[#allocation2 + $0x3d8] sm:$0xff]  ;;  %v303_v39 = vld [vmem:[#allocation2 + $0x3b0] sm:$0xff]  ;;  %v42_v42 = vperm.slane %v35_v28, 0 }
  0x25   :  { %223 = vmatpush.msra.mxu2 %v109_v55  ;;  %243 = vmatpush.msra.mxu3 %v141_v56  ;;  %v305_v33 = vld [vmem:[#allocation2 + $0x3c0] sm:$0xff]  ;;  %v270_v36 = vld [vmem:[#allocation2 + $0x2a8] sm:$0xff]  ;;  %v267_v40 = vld [vmem:[#allocation2 + $0x290] sm:$0xff]  ;;  %v43_v43 = vperm.slane %v35_v28, 1  ;;  %v70_v48 = vperm.slane %v64_v31, 0  ;;  %v71_v49 = vperm.slane %v64_v31, 1 }
  0x26   :  { %184 = vmatpush.msra.mxu0 %v106_v57  ;;  %204 = vmatpush.msra.mxu1 %v138_v58  ;;  %v49_v34 = vld [vmem:[#allocation2 + $0x1] ss:$8 sm:$0x3]  ;;  %v79_v37 = vld [vmem:[#allocation2 + $0x3] ss:$8 sm:$0x3] }
  0x27   :  { %224 = vmatpush.msra.mxu2 %v107_v59  ;;  %244 = vmatpush.msra.mxu3 %v139_v60  ;;  %v269_v35 = vld [vmem:[#allocation2 + $0x2a0] sm:$0xff]  ;;  %v306_v38 = vld [vmem:[#allocation2 + $0x3c8] sm:$0xff]  ;;  %v268_v41 = vld [vmem:[#allocation2 + $0x298] sm:$0xff]  ;;  %v55_v44 = vperm.slane %v49_v34, 0  ;;  %v56_v45 = vperm.slane %v49_v34, 1  ;;  %v85_v50 = vperm.slane %v79_v37, 0 }
  0x28   :  { %185 = vmatpush.msra.mxu0 %v104_v61  ;;  %205 = vmatpush.msra.mxu1 %v136_v62  ;;  %v304_v46 = vld [vmem:[#allocation2 + $0x3b8] sm:$0xff]  ;;  %v301_v47 = vld [vmem:[#allocation2 + $0x3a0] sm:$0xff]  ;;  %v86_v52 = vperm.slane %v79_v37, 1  ;;  %v266_v53 = vld [vmem:[#allocation2 + $0x288] sm:$0xff] }
  0x29   :  { %225 = vmatpush.msra.mxu2 %v105_v63  ;;  %245 = vmatpush.msra.mxu3 %v137_v0  ;;  %v265_v51 = vld [vmem:[#allocation2 + $0x280] sm:$0xff]  ;;  %v302_v54 = vld [vmem:[#allocation2 + $0x3a8] sm:$0xff]  ;;  %v263_v57 = vld [vmem:[#allocation2 + $0x270] sm:$0xff] }
  0x2a   :  { %186 = vmatpush.msra.mxu0 %v102_v1  ;;  %206 = vmatpush.msra.mxu1 %v134_v2  ;;  %v299_v58 = vld [vmem:[#allocation2 + $0x390] sm:$0xff]  ;;  %v264_v63 = vld [vmem:[#allocation2 + $0x278] sm:$0xff]  ;;  %v294_v31 = vld [vmem:[#allocation2 + $0x368] sm:$0xff] }
  0x2b   :  { %226 = vmatpush.msra.mxu2 %v103_v3  ;;  %246 = vmatpush.msra.mxu3 %v135_v4  ;;  %v300_v0 = vld [vmem:[#allocation2 + $0x398] sm:$0xff]  ;;  %v255_v28 = vld [vmem:[#allocation2 + $0x230] sm:$0xff]  ;;  %v254_v34 = vld [vmem:[#allocation2 + $0x228] sm:$0xff] }
  0x2c   :  { %322 = vmatpush.msrb.mxu0 %v283_v5  ;;  %342 = vmatpush.msrb.mxu1 %v315_v11  ;;  %v30_v4 = vld [vmem:[#allocation2 + $0x10] ss:$8 sm:$0x3]  ;;  %v261_v5 = vld [vmem:[#allocation2 + $0x260] sm:$0xff]  ;;  %v290_v37 = vld [vmem:[#allocation2 + $0x348] sm:$0xff] }
  0x2d   :  { %362 = vmatpush.msrb.mxu2 %v284_v6  ;;  %382 = vmatpush.msrb.mxu3 %v316_v12  ;;  %v94_v12 = vperm.slane %v30_v4, 0 }
  0x2e   :  { %323 = vmatpush.msrb.mxu0 %v281_v7  ;;  %343 = vmatpush.msrb.mxu1 %v313_v13  ;;  %v95_v13 = vperm.slane %v30_v4, 1 }
  0x2f   :  { %363 = vmatpush.msrb.mxu2 %v282_v8  ;;  %383 = vmatpush.msrb.mxu3 %v314_v16 }
  0x30   :  { %324 = vmatpush.msrb.mxu0 %v279_v9  ;;  %344 = vmatpush.msrb.mxu1 %v311_v17  ;;  %v262_v9 = vld [vmem:[#allocation2 + $0x268] sm:$0xff] }
  0x31   :  { %364 = vmatpush.msrb.mxu2 %v280_v10  ;;  %384 = vmatpush.msrb.mxu3 %v312_v18 }
  0x32   :  { %325 = vmatpush.msrb.mxu0 %v277_v14  ;;  %345 = vmatpush.msrb.mxu1 %v309_v21  ;;  %v297_v21 = vld [vmem:[#allocation2 + $0x380] sm:$0xff] }
  0x33   :  { %365 = vmatpush.msrb.mxu2 %v278_v15  ;;  %385 = vmatpush.msrb.mxu3 %v310_v26  ;;  %v258_v26 = vld [vmem:[#allocation2 + $0x248] sm:$0xff] }
  0x34   :  { %326 = vmatpush.msrb.mxu0 %v275_v19  ;;  %346 = vmatpush.msrb.mxu1 %v307_v27  ;;  %v296_v27 = vld [vmem:[#allocation2 + $0x378] sm:$0xff] }
  0x35   :  { %366 = vmatpush.msrb.mxu2 %v276_v20  ;;  %386 = vmatpush.msrb.mxu3 %v308_v32  ;;  %v259_v20 = vld [vmem:[#allocation2 + $0x250] sm:$0xff]  ;;  %v253_v32 = vld [vmem:[#allocation2 + $0x220] sm:$0xff] }
  0x36   :  { %327 = vmatpush.msrb.mxu0 %v273_v22  ;;  %347 = vmatpush.msrb.mxu1 %v305_v33  ;;  %v260_v22 = vld [vmem:[#allocation2 + $0x258] sm:$0xff]  ;;  %v291_v33 = vld [vmem:[#allocation2 + $0x350] sm:$0xff] }
  0x37   :  { %367 = vmatpush.msrb.mxu2 %v274_v23  ;;  %387 = vmatpush.msrb.mxu3 %v306_v38  ;;  %v298_v23 = vld [vmem:[#allocation2 + $0x388] sm:$0xff]  ;;  %v287_v38 = vld [vmem:[#allocation2 + $0x330] sm:$0xff] }
  0x38   :  { %328 = vmatpush.msrb.mxu0 %v271_v29  ;;  %348 = vmatpush.msrb.mxu1 %v303_v39  ;;  %v293_v29 = vld [vmem:[#allocation2 + $0x360] sm:$0xff]  ;;  %v288_v39 = vld [vmem:[#allocation2 + $0x338] sm:$0xff] }
  0x39   :  { %368 = vmatpush.msrb.mxu2 %v272_v30  ;;  %388 = vmatpush.msrb.mxu3 %v304_v46  ;;  %v256_v30 = vld [vmem:[#allocation2 + $0x238] sm:$0xff] }
  0x3a   :  { %329 = vmatpush.msrb.mxu0 %v269_v35  ;;  %349 = vmatpush.msrb.mxu1 %v301_v47  ;;  %v292_v35 = vld [vmem:[#allocation2 + $0x358] sm:$0xff] }
  0x3b   :  { %369 = vmatpush.msrb.mxu2 %v270_v36  ;;  %389 = vmatpush.msrb.mxu3 %v302_v54  ;;  %v289_v36 = vld [vmem:[#allocation2 + $0x340] sm:$0xff] }
  0x3c   :  { %330 = vmatpush.msrb.mxu0 %v267_v40  ;;  %350 = vmatpush.msrb.mxu1 %v299_v58  ;;  %v285_v40 = vld [vmem:[#allocation2 + $0x320] sm:$0xff] }
  0x3d   :  { %370 = vmatpush.msrb.mxu2 %v268_v41  ;;  %390 = vmatpush.msrb.mxu3 %v300_v0  ;;  %v286_v41 = vld [vmem:[#allocation2 + $0x328] sm:$0xff] }
  0x3e   :  { %331 = vmatpush.msrb.mxu0 %v265_v51  ;;  %351 = vmatpush.msrb.mxu1 %v297_v21 }
  0x3f   :  { %371 = vmatpush.msrb.mxu2 %v266_v53  ;;  %391 = vmatpush.msrb.mxu3 %v298_v23 }
  0x40   :  { %332 = vmatpush.msrb.mxu0 %v263_v57 }
  0x41   :  { %372 = vmatpush.msrb.mxu2 %v264_v63  ;;  %392 = vmatpush.msrb.mxu3 %v296_v27 }
  0x42   :  { %333 = vmatpush.msrb.mxu0 %v261_v5 }
  0x43   :  { %373 = vmatpush.msrb.mxu2 %v262_v9  ;;  %393 = vmatpush.msrb.mxu3 %v294_v31 }
  0x44   :  { %334 = vmatpush.msrb.mxu0 %v259_v20 }
  0x45   :  { %374 = vmatpush.msrb.mxu2 %v260_v22  ;;  %394 = vmatpush.msrb.mxu3 %v292_v35 }
  0x47   :  { %375 = vmatpush.msrb.mxu2 %v258_v26  ;;  %395 = vmatpush.msrb.mxu3 %v290_v37 }
  0x49   :  { %376 = vmatpush.msrb.mxu2 %v256_v30  ;;  %396 = vmatpush.msrb.mxu3 %v288_v39 }
  0x4b   :  { %377 = vmatpush.msrb.mxu2 %v254_v34  ;;  %397 = vmatpush.msrb.mxu3 %v286_v41 }
  0x7a   :  { %v39_v24 = vpop.permute.xlu0 %38 }
  0x7b   :  { %v67_v25 = vpop.permute.xlu1 %66  ;;  %v46_v59 = vmul.f32 %v42_v42, %v39_v24  ;;  %v47_v60 = vmul.f32 %v43_v43, %v39_v24  ;;  %v257_v24 = vld [vmem:[#allocation2 + $0x240] sm:$0xff]  ;;  %v32_v42 = vld [vmem:[#allocation2 + $0x11] ss:$8 sm:$0x3] }
  0x7c   :  { %v74_v1 = vmul.f32 %v70_v48, %v67_v25  ;;  %v75_v2 = vmul.f32 %v71_v49, %v67_v25  ;;  %v295_v25 = vld [vmem:[#allocation2 + $0x370] sm:$0xff]  ;;  %335 = vmatpush.msrb.mxu0 %v257_v24  ;;  %v167_v43 = vperm.slane %v32_v42, 0  ;;  %v168_v48 = vperm.slane %v32_v42, 1 }
  0x7d   :  { %352 = vmatpush.msrb.mxu1 %v295_v25 }
  0x7e   :  { %336 = vmatpush.msrb.mxu0 %v255_v28 }
  0x7f   :  { %353 = vmatpush.msrb.mxu1 %v293_v29 }
  0x80   :  { %337 = vmatpush.msrb.mxu0 %v253_v32 }
  0x81   :  { %354 = vmatpush.msrb.mxu1 %v291_v33 }
  0x83   :  { %v52_v55 = vpop.permute.xlu0 %51  ;;  %355 = vmatpush.msrb.mxu1 %v289_v36 }
  0x84   :  { %v82_v56 = vpop.permute.xlu1 %81  ;;  %v59_v61 = vmul.f32 %v55_v44, %v52_v55  ;;  %v60_v62 = vmul.f32 %v56_v45, %v52_v55  ;;  %v34_v55 = vld [vmem:[#allocation2 + $0x12] ss:$8 sm:$0x3] }
  0x85   :  { %v89_v3 = vmul.f32 %v85_v50, %v82_v56  ;;  %v90_v8 = vmul.f32 %v86_v52, %v82_v56  ;;  %356 = vmatpush.msrb.mxu1 %v287_v38  ;;  %v319_v56 = vperm.slane %v34_v55, 1 }
  0x86   :  { %v61_v6 = vadd.f32 %v59_v61, %v46_v59  ;;  %v62_v7 = vadd.f32 %v60_v62, %v47_v60  ;;  %v318_v61 = vperm.slane %v34_v55, 0 }
  0x87   :  { %357 = vmatpush.msrb.mxu1 %v285_v40 }
  0x88   :  { %v76_v10 = vadd.f32 %v74_v1, %v61_v6  ;;  %v77_v11 = vadd.f32 %v75_v2, %v62_v7  ;;  %v526_v2 = vmov 4.0  }
  0x89   :  { %465 = vrcp.f32 %v526_v2 }
  0x8a   :  { %v91_v14 = vadd.f32 %v89_v3, %v76_v10  ;;  %v92_v15 = vadd.f32 %v90_v8, %v77_v11 }
  0x8c   :  { %v98_v16 = vadd.f32 %v94_v12, %v91_v14  ;;  %v99_v17 = vadd.f32 %v95_v13, %v92_v15 }
  0x8e   :  { %v100_v18 = vmax.f32 %v98_v16, 0.0  ;;  %v101_v19 = vmax.f32 %v99_v17, 0.0 }
  0x8f   :  { %v466_v3 = vpop.eup %465 }
  0x90   :  { %187 = vmatmul.f32.vlgmr.msra.gmra.mxu0 %v100_v18  ;;  %207 = vmatmul.f32.vlgmr.msra.gmra.mxu1 %v101_v19  ;;  %v412_v4 = vmul.f32 4.0, %v466_v3  ;;  %vm416_vm0 = vweird.f32 %v466_v3 }
  0x91   :  { %227 = vmatmul.f32.vlgmr.msra.gmra.mxu2 %v100_v18  ;;  %247 = vmatmul.f32.vlgmr.msra.gmra.mxu3 %v101_v19 }
  0x92   :  { %v413_v5 = vsub.f32 1.0, %v412_v4 }
  0x94   :  { %v414_v9 = vmul.f32 %v466_v3, %v413_v5 }
  0x96   :  { %v415_v12 = vadd.f32 %v466_v3, %v414_v9 }
  0x98   :  { %v417_v15 = vsel %vm416_vm0, %v466_v3, %v415_v12 }
 0x10d   :  { %v188_v44 = vpop.f32.mrf.mxu0  ;;  %v208_v46 = vpop.f32.mrf.mxu1 }
 0x10e   :  { %v189_v45 = vadd.f32 %v188_v44, %v167_v43 }
 0x110   :  { %v209_v47 = vadd.f32 %v208_v46, %v189_v45 }
 0x112   :  { %v251_v49 = vmax.f32 %v209_v47, 0.0 }
 0x114   :  { %v228_v50 = vpop.f32.mrf.mxu2  ;;  %338 = vmatmul.f32.vlgmr.msrb.gmra.mxu0 %v251_v49  ;;  %378 = vmatmul.f32.vlgmr.msrb.gmra.mxu2 %v251_v49  ;;  %v248_v52 = vpop.f32.mrf.mxu3 }
 0x115   :  { %v229_v51 = vadd.f32 %v228_v50, %v168_v48 }
 0x117   :  { %v249_v53 = vadd.f32 %v248_v52, %v229_v51 }
 0x119   :  { %v252_v54 = vmax.f32 %v249_v53, 0.0 }
 0x11b   :  { %358 = vmatmul.f32.vlgmr.msrb.gmra.mxu1 %v252_v54  ;;  %398 = vmatmul.f32.vlgmr.msrb.gmra.mxu3 %v252_v54 }
 0x191   :  { %v339_v62 = vpop.f32.mrf.mxu0 }
 0x192   :  { %v340_v0 = vadd.f32 %v339_v62, %v318_v61 }
 0x197   :  { %v379_v57 = vpop.f32.mrf.mxu2 }
 0x198   :  { %v380_v58 = vadd.f32 %v379_v57, %v319_v56  ;;  %v359_v63 = vpop.f32.mrf.mxu1 }
 0x199   :  { %v360_v1 = vadd.f32 %v359_v63, %v340_v0 }
 0x19e   :  { %v399_v59 = vpop.f32.mrf.mxu3 }
 0x19f   :  { %v400_v60 = vadd.f32 %v399_v59, %v380_v58 }
 0x1a1   :  { %402 = vadd.xlane.f32.xlu2 %v400_v60 }
 0x1b9   :  { %424 = vperm.xlu2 %463, %v360_v1  }
 0x214   :  { %v403_v6 = vpop.xlane.xlu2 %402 }
 0x215   :  { %v404_v7 = vrot.slane %v403_v6, 4 }
 0x217   :  { %v405_v8 = vadd.f32 %v404_v7, %v403_v6 }
 0x219   :  { %v406_v10 = vrot.slane %v405_v8, 2 }
 0x21b   :  { %v407_v11 = vadd.f32 %v406_v10, %v405_v8 }
 0x21c   :  { %v425_v18 = vpop.permute.xlu2 %424 }
 0x21d   :  { %v408_v13 = vrot.slane %v407_v11, 1 }
 0x21f   :  { %v409_v14 = vadd.f32 %v408_v13, %v407_v11 }
 0x221   :  { %446 = vpush %v409_v14 }
 0x222   :  { %448 = vpush %v417_v15 }
 0x252   :  { %s447_s0 = spop %446 }
 0x253   :  { %s449_s1 = spop %448 }
 0x254   :  { %s419_s18 = smul.f32 %s449_s1, %s447_s0 }
 0x256   :  { %v420_v16 = vstv %s419_s18 }
 0x257   :  { %v421_v17 = vsub.f32 %v400_v60, %v420_v16 }
 0x259   :  { %v427_v19 = vadd.f32 %v425_v18, %v421_v17 }
 0x25b   :  { %428 = vst [vmem:[#allocation5] sm:$0xff] %v427_v19 }
 0x25c   :  { %439 = dma.vmem_to_hbm [thread:$0]  %s435_s20, 128, %s437_s23, [#allocation4]  }
 0x25d   :  { %517 = dma.done.wait [#allocation4], 128  }
 0x25e   :  { %518 = vsyncadd [#allocation4], 4294967168 }
 0x25f   :  { %444 = vsyncpa [#allocation3], 1 }
 0x260   :  { %445 = vsyncpa [#allocation4], 1 }

</bundles_post_ra>
